<compile_context>
chip_gen: v7x
topology: tpu7x:2x2x1
jax: 0.10.0
libtpu: 0.0.40
codegen_flags: <defaults>
</compile_context>

<pallas_src>
from functools import partial

import jax
import jax.numpy as jnp
from jax.experimental import pallas as pl
from jax.experimental.pallas import tpu as pltpu


def _sru_kernel(gm_ref, w_ref, b_ref, wg_ref, x_ref, o_ref, *,
                samples_per_block, channels, elems_per_group,
                gate_threshold, eps):
    # gm_ref : (R, R)  group-membership matrix (1 if rows share (sample,group))
    # w_ref  : (R, 1)  per-row affine weight   (channel weight tiled over bn)
    # b_ref  : (R, 1)  per-row affine bias
    # wg_ref : (R, 1)  per-row w_gamma = w / sum(w)  (precomputed in wrapper)
    # x_ref  : (R, HW) input slab for `samples_per_block` samples
    # o_ref  : (R, HW) output slab
    M = elems_per_group
    denom = max(M - 1, 1)          # unbiased std (torch default); M=1 guard
    t = gate_threshold

    x = x_ref[...]                                   # (R, HW) f32
    gm = gm_ref[...]                                 # (R, R)

    # ---- pass 1: per-row lane reduce -> per-group mean (tiny matmul) -------
    s = jnp.sum(x, axis=1, keepdims=True)            # (R, 1)   XLU lane reduce
    mean = jnp.dot(gm, s, preferred_element_type=jnp.float32) * (1.0 / M)

    # ---- pass 2: centered sum of squares -> unbiased std -------------------
    d = x - mean                                      # (R, HW)
    ss = jnp.sum(d * d, axis=1, keepdims=True)        # (R, 1)
    gss = jnp.dot(gm, ss, preferred_element_type=jnp.float32)
    var = gss * (1.0 / denom)
    std = jnp.sqrt(jnp.maximum(var, 0.0))             # (R, 1)

    # ---- fold norm + affine into per-row scale (division at (R,1) only) ----
    scale = w_ref[...] / (std + eps)                  # (R, 1)
    gn = d * scale + b_ref[...]                       # (R, HW)  2 VPU ops/elem

    # ---- gating (sigmoid lands on EUP) --------------------------------------
    rw = jax.nn.sigmoid(gn * wg_ref[...])             # (R, HW)

    # ---- reconstruct: per-sample cross-add of channel halves, direct writes -
    C = channels
    half = C // 2
    for smp in range(samples_per_block):              # static, small
        base = smp * C
        gn_t = gn[base:base + half]
        gn_b = gn[base + half:base + C]
        rw_t = rw[base:base + half]
        rw_b = rw[base + half:base + C]
        # out_top = info(top) + noninfo(bottom); out_bot = info(bot) + noninfo(top)
        o_ref[base:base + half, :] = (
            jnp.where(rw_t >= t, gn_t, 0.0) + jnp.where(rw_b < t, gn_b, 0.0))
        o_ref[base + half:base + C, :] = (
            jnp.where(rw_b >= t, gn_b, 0.0) + jnp.where(rw_t < t, gn_t, 0.0))


def sru_forward(x, weight, bias, *, group_num=16, gate_threshold=0.5,
                eps=1e-10, block_target_bytes=2 << 20):
    """x: (N, C, H, W) float32 (NCHW, as in the PyTorch module)."""
    N, C, H, W = x.shape
    HW = H * W
    assert C % group_num == 0 and C % 2 == 0
    assert C % 8 == 0, "C must be a multiple of 8 (f32 sublane tile)"
    cpg = C // group_num

    # --- pick samples-per-block: large lane-dense slabs, but keep the tiny
    #     group-membership matrix (bn*C)^2 bounded and bn a divisor of N.
    slab_bytes = C * HW * 4
    bn = max(1, min(N, block_target_bytes // slab_bytes))
    bn = min(bn, max(1, 512 // C))          # cap R = bn*C (gm is (R,R))
    while N % bn:
        bn -= 1
    R = bn * C
    grid = (N // bn,)

    # TODO(synk): if H*W is not a multiple of 128, stores use masked vst;
    # padding+masking the stats would be needed for a fully lane-dense path.

    xf = x.reshape(N * C, HW).astype(jnp.float32)
    w_col = weight.reshape(C, 1).astype(jnp.float32)
    b_col = bias.reshape(C, 1).astype(jnp.float32)
    wg_col = w_col / jnp.sum(w_col)                      # hoisted w_gamma
    w2 = jnp.tile(w_col, (bn, 1))                        # (R, 1)
    b2 = jnp.tile(b_col, (bn, 1))
    wg2 = jnp.tile(wg_col, (bn, 1))

    # group-membership matrix over the block's rows: rows i, j belong to the
    # same (sample, group) iff i//cpg == j//cpg (block start aligns to C).
    rid = jnp.arange(R, dtype=jnp.int32) // cpg
    gm = (rid[:, None] == rid[None, :]).astype(jnp.float32)   # (R, R)

    kernel = partial(
        _sru_kernel,
        samples_per_block=bn,
        channels=C,
        elems_per_group=cpg * HW,
        gate_threshold=gate_threshold,
        eps=eps,
    )

    out = pl.pallas_call(
        kernel,
        out_shape=jax.ShapeDtypeStruct((N * C, HW), jnp.float32),
        grid_spec=pltpu.PrefetchScalarGridSpec(
            num_scalar_prefetch=0,
            grid=grid,
            in_specs=[
                pl.BlockSpec((R, R), lambda n: (0, 0)),   # gm  (fetched once)
                pl.BlockSpec((R, 1), lambda n: (0, 0)),   # weight
                pl.BlockSpec((R, 1), lambda n: (0, 0)),   # bias
                pl.BlockSpec((R, 1), lambda n: (0, 0)),   # w_gamma
                pl.BlockSpec((R, HW), lambda n: (n, 0)),  # x slab
            ],
            out_specs=pl.BlockSpec((R, HW), lambda n: (n, 0)),
        ),
        compiler_params=pltpu.CompilerParams(
            dimension_semantics=("parallel",),
            vmem_limit_bytes=32 * 1024 * 1024,
        ),
    )(gm, w2, b2, wg2, xf)
    return out.reshape(N, C, H, W)


def sru_reference(x, weight, bias, *, group_num=16, gate_threshold=0.5, eps=1e-10):
    """Pure-JAX reference mirroring the PyTorch forward (unbiased std)."""
    N, C, H, W = x.shape
    xg = x.reshape(N, group_num, -1)
    mean = jnp.mean(xg, axis=2, keepdims=True)
    std = jnp.std(xg, axis=2, keepdims=True, ddof=1)
    xn = (xg - mean) / (std + eps)
    xn = xn.reshape(N, C, H, W)
    gn = xn * weight.reshape(1, C, 1, 1) + bias.reshape(1, C, 1, 1)
    w_gamma = (weight / jnp.sum(weight)).reshape(1, C, 1, 1)
    rw = jax.nn.sigmoid(gn * w_gamma)
    x1 = jnp.where(rw >= gate_threshold, gn, 0.0)
    x2 = jnp.where(rw < gate_threshold, gn, 0.0)
    half = C // 2
    return jnp.concatenate(
        [x1[:, :half] + x2[:, half:], x1[:, half:] + x2[:, :half]], axis=1
    )


if __name__ == "__main__":
    key = jax.random.PRNGKey(0)
    k_x, k_w = jax.random.split(key)

    N, C, H, W = 2, 32, 16, 16      # oup_channels=32, group_num=16
    group_num = 16

    x = jax.random.normal(k_x, (N, C, H, W), dtype=jnp.float32)
    # GroupBatchnorm2d.__init__: weight ~ randn(C,1,1), bias = zeros(C,1,1)
    weight = jax.random.normal(k_w, (C,), dtype=jnp.float32)
    bias = jnp.zeros((C,), dtype=jnp.float32)

    out = sru_forward(x, weight, bias, group_num=group_num,
                      gate_threshold=0.5, eps=1e-10)
    out = jax.block_until_ready(out)

    ref = sru_reference(x, weight, bias, group_num=group_num,
                        gate_threshold=0.5, eps=1e-10)
    assert out.shape == (N, C, H, W)
    assert jnp.allclose(out, ref, rtol=1e-4, atol=1e-5), (
        float(jnp.max(jnp.abs(out - ref)))
    )
    print("KERNEL_OK")
</pallas_src>

<mosaic_0001>
module attributes {stable_mosaic.version = 11 : i64} {
  func.func @_sru_kernel(%arg0: i32, %arg1: memref<64x64xf32, #tpu.memory_space<vmem>>, %arg2: memref<64x1xf32, #tpu.memory_space<vmem>>, %arg3: memref<64x1xf32, #tpu.memory_space<vmem>>, %arg4: memref<64x1xf32, #tpu.memory_space<vmem>>, %arg5: memref<64x256xf32, #tpu.memory_space<vmem>>, %arg6: memref<64x256xf32, #tpu.memory_space<vmem>>) attributes {dimension_semantics = [#tpu.dimension_semantics<parallel>], iteration_bounds = array<i64: 1>, scalar_prefetch = 0 : i64, scratch_operands = 0 : i64, tpu.core_type = #tpu.core_type<tc>, window_params = [{pipeline_mode = #tpu.pipeline_mode<synchronous>, transform_indices = @transform_0, window_bounds = array<i64: 64, 64>}, {pipeline_mode = #tpu.pipeline_mode<synchronous>, transform_indices = @transform_1, window_bounds = array<i64: 64, 1>}, {pipeline_mode = #tpu.pipeline_mode<synchronous>, transform_indices = @transform_2, window_bounds = array<i64: 64, 1>}, {pipeline_mode = #tpu.pipeline_mode<synchronous>, transform_indices = @transform_3, window_bounds = array<i64: 64, 1>}, {transform_indices = @transform_4, window_bounds = array<i64: 64, 256>}, {transform_indices = @transform_5, window_bounds = array<i64: 64, 256>}]} {
    %c0 = arith.constant 0 : index
    %c0_0 = arith.constant 0 : index
    %0 = vector.load %arg5[%c0, %c0_0] : memref<64x256xf32, #tpu.memory_space<vmem>>, vector<64x256xf32>
    %c0_1 = arith.constant 0 : index
    %c0_2 = arith.constant 0 : index
    %1 = vector.load %arg1[%c0_1, %c0_2] : memref<64x64xf32, #tpu.memory_space<vmem>>, vector<64x64xf32>
    %cst = arith.constant dense<0.000000e+00> : vector<64xf32>
    %2 = vector.multi_reduction <add>, %0, %cst [1] : vector<64x256xf32> to vector<64xf32>
    %3 = vector.shape_cast %2 : vector<64xf32> to vector<64x1xf32>
    %cst_3 = arith.constant dense<0.000000e+00> : vector<64x1xf32>
    %4 = tpu.matmul %1, %3, %cst_3 {dimension_numbers = #tpu.dot_dimension_numbers<[1], [0], [0], [1], [0, 0, 1, 1], [], []>} : vector<64x64xf32>, vector<64x1xf32>, vector<64x1xf32> -> vector<64x1xf32>
    %cst_4 = arith.constant 0.001953125 : f32
    %5 = vector.broadcast %cst_4 : f32 to vector<64x1xf32>
    %6 = arith.mulf %4, %5 : vector<64x1xf32>
    %7 = vector.broadcast %6 : vector<64x1xf32> to vector<64x256xf32>
    %8 = arith.subf %0, %7 : vector<64x256xf32>
    %9 = arith.mulf %8, %8 : vector<64x256xf32>
    %cst_5 = arith.constant dense<0.000000e+00> : vector<64xf32>
    %10 = vector.multi_reduction <add>, %9, %cst_5 [1] : vector<64x256xf32> to vector<64xf32>
    %11 = vector.shape_cast %10 : vector<64xf32> to vector<64x1xf32>
    %cst_6 = arith.constant dense<0.000000e+00> : vector<64x1xf32>
    %12 = tpu.matmul %1, %11, %cst_6 {dimension_numbers = #tpu.dot_dimension_numbers<[1], [0], [0], [1], [0, 0, 1, 1], [], []>} : vector<64x64xf32>, vector<64x1xf32>, vector<64x1xf32> -> vector<64x1xf32>
    %cst_7 = arith.constant 0.00195694715 : f32
    %13 = vector.broadcast %cst_7 : f32 to vector<64x1xf32>
    %14 = arith.mulf %12, %13 : vector<64x1xf32>
    %cst_8 = arith.constant 0.000000e+00 : f32
    %15 = vector.broadcast %cst_8 : f32 to vector<64x1xf32>
    %16 = arith.maximumf %14, %15 : vector<64x1xf32>
    %17 = math.sqrt %16 : vector<64x1xf32>
    %c0_9 = arith.constant 0 : index
    %c0_10 = arith.constant 0 : index
    %18 = vector.load %arg2[%c0_9, %c0_10] : memref<64x1xf32, #tpu.memory_space<vmem>>, vector<64x1xf32>
    %cst_11 = arith.constant 1.000000e-10 : f32
    %19 = vector.broadcast %cst_11 : f32 to vector<64x1xf32>
    %20 = arith.addf %17, %19 : vector<64x1xf32>
    %21 = arith.divf %18, %20 : vector<64x1xf32>
    %22 = vector.broadcast %21 : vector<64x1xf32> to vector<64x256xf32>
    %23 = arith.mulf %8, %22 : vector<64x256xf32>
    %c0_12 = arith.constant 0 : index
    %c0_13 = arith.constant 0 : index
    %24 = vector.load %arg3[%c0_12, %c0_13] : memref<64x1xf32, #tpu.memory_space<vmem>>, vector<64x1xf32>
    %25 = vector.broadcast %24 : vector<64x1xf32> to vector<64x256xf32>
    %26 = arith.addf %23, %25 : vector<64x256xf32>
    %c0_14 = arith.constant 0 : index
    %c0_15 = arith.constant 0 : index
    %27 = vector.load %arg4[%c0_14, %c0_15] : memref<64x1xf32, #tpu.memory_space<vmem>>, vector<64x1xf32>
    %28 = vector.broadcast %27 : vector<64x1xf32> to vector<64x256xf32>
    %29 = arith.mulf %26, %28 : vector<64x256xf32>
    %30 = arith.negf %29 : vector<64x256xf32>
    %31 = math.exp %30 : vector<64x256xf32>
    %cst_16 = arith.constant 1.000000e+00 : f32
    %32 = vector.broadcast %cst_16 : f32 to vector<64x256xf32>
    %33 = arith.addf %32, %31 : vector<64x256xf32>
    %34 = arith.divf %32, %33 : vector<64x256xf32>
    %35 = vector.extract_strided_slice %26 {offsets = [0, 0], sizes = [16, 256], strides = [1, 1]} : vector<64x256xf32> to vector<16x256xf32>
    %36 = vector.extract_strided_slice %26 {offsets = [16, 0], sizes = [16, 256], strides = [1, 1]} : vector<64x256xf32> to vector<16x256xf32>
    %37 = vector.extract_strided_slice %34 {offsets = [0, 0], sizes = [16, 256], strides = [1, 1]} : vector<64x256xf32> to vector<16x256xf32>
    %38 = vector.extract_strided_slice %34 {offsets = [16, 0], sizes = [16, 256], strides = [1, 1]} : vector<64x256xf32> to vector<16x256xf32>
    %cst_17 = arith.constant 5.000000e-01 : f32
    %39 = vector.broadcast %cst_17 : f32 to vector<16x256xf32>
    %40 = arith.cmpf oge, %37, %39 : vector<16x256xf32>
    %cst_18 = arith.constant 0.000000e+00 : f32
    %41 = vector.broadcast %cst_18 : f32 to vector<16x256xf32>
    %42 = arith.select %40, %35, %41 : vector<16x256xi1>, vector<16x256xf32>
    %cst_19 = arith.constant 5.000000e-01 : f32
    %43 = vector.broadcast %cst_19 : f32 to vector<16x256xf32>
    %44 = arith.cmpf olt, %38, %43 : vector<16x256xf32>
    %cst_20 = arith.constant 0.000000e+00 : f32
    %45 = vector.broadcast %cst_20 : f32 to vector<16x256xf32>
    %46 = arith.select %44, %36, %45 : vector<16x256xi1>, vector<16x256xf32>
    %47 = arith.addf %42, %46 : vector<16x256xf32>
    %c0_21 = arith.constant 0 : index
    %c0_22 = arith.constant 0 : index
    %48 = vector.load %arg6[%c0_21, %c0_22] : memref<64x256xf32, #tpu.memory_space<vmem>>, vector<16x256xf32>
    tpu.vector_store %arg6[%c0_21, %c0_22], %47 {strides = array<i32>} : memref<64x256xf32, #tpu.memory_space<vmem>>, vector<16x256xf32>,
    %cst_23 = arith.constant 5.000000e-01 : f32
    %49 = vector.broadcast %cst_23 : f32 to vector<16x256xf32>
    %50 = arith.cmpf oge, %38, %49 : vector<16x256xf32>
    %cst_24 = arith.constant 0.000000e+00 : f32
    %51 = vector.broadcast %cst_24 : f32 to vector<16x256xf32>
    %52 = arith.select %50, %36, %51 : vector<16x256xi1>, vector<16x256xf32>
    %cst_25 = arith.constant 5.000000e-01 : f32
    %53 = vector.broadcast %cst_25 : f32 to vector<16x256xf32>
    %54 = arith.cmpf olt, %37, %53 : vector<16x256xf32>
    %cst_26 = arith.constant 0.000000e+00 : f32
    %55 = vector.broadcast %cst_26 : f32 to vector<16x256xf32>
    %56 = arith.select %54, %35, %55 : vector<16x256xi1>, vector<16x256xf32>
    %57 = arith.addf %52, %56 : vector<16x256xf32>
    %c16 = arith.constant 16 : index
    %c0_27 = arith.constant 0 : index
    %58 = vector.load %arg6[%c16, %c0_27] : memref<64x256xf32, #tpu.memory_space<vmem>>, vector<16x256xf32>
    tpu.vector_store %arg6[%c16, %c0_27], %57 {strides = array<i32>} : memref<64x256xf32, #tpu.memory_space<vmem>>, vector<16x256xf32>,
    %59 = vector.extract_strided_slice %26 {offsets = [32, 0], sizes = [16, 256], strides = [1, 1]} : vector<64x256xf32> to vector<16x256xf32>
    %60 = vector.extract_strided_slice %26 {offsets = [48, 0], sizes = [16, 256], strides = [1, 1]} : vector<64x256xf32> to vector<16x256xf32>
    %61 = vector.extract_strided_slice %34 {offsets = [32, 0], sizes = [16, 256], strides = [1, 1]} : vector<64x256xf32> to vector<16x256xf32>
    %62 = vector.extract_strided_slice %34 {offsets = [48, 0], sizes = [16, 256], strides = [1, 1]} : vector<64x256xf32> to vector<16x256xf32>
    %cst_28 = arith.constant 5.000000e-01 : f32
    %63 = vector.broadcast %cst_28 : f32 to vector<16x256xf32>
    %64 = arith.cmpf oge, %61, %63 : vector<16x256xf32>
    %cst_29 = arith.constant 0.000000e+00 : f32
    %65 = vector.broadcast %cst_29 : f32 to vector<16x256xf32>
    %66 = arith.select %64, %59, %65 : vector<16x256xi1>, vector<16x256xf32>
    %cst_30 = arith.constant 5.000000e-01 : f32
    %67 = vector.broadcast %cst_30 : f32 to vector<16x256xf32>
    %68 = arith.cmpf olt, %62, %67 : vector<16x256xf32>
    %cst_31 = arith.constant 0.000000e+00 : f32
    %69 = vector.broadcast %cst_31 : f32 to vector<16x256xf32>
    %70 = arith.select %68, %60, %69 : vector<16x256xi1>, vector<16x256xf32>
    %71 = arith.addf %66, %70 : vector<16x256xf32>
    %c32 = arith.constant 32 : index
    %c0_32 = arith.constant 0 : index
    %72 = vector.load %arg6[%c32, %c0_32] : memref<64x256xf32, #tpu.memory_space<vmem>>, vector<16x256xf32>
    tpu.vector_store %arg6[%c32, %c0_32], %71 {strides = array<i32>} : memref<64x256xf32, #tpu.memory_space<vmem>>, vector<16x256xf32>,
    %cst_33 = arith.constant 5.000000e-01 : f32
    %73 = vector.broadcast %cst_33 : f32 to vector<16x256xf32>
    %74 = arith.cmpf oge, %62, %73 : vector<16x256xf32>
    %cst_34 = arith.constant 0.000000e+00 : f32
    %75 = vector.broadcast %cst_34 : f32 to vector<16x256xf32>
    %76 = arith.select %74, %60, %75 : vector<16x256xi1>, vector<16x256xf32>
    %cst_35 = arith.constant 5.000000e-01 : f32
    %77 = vector.broadcast %cst_35 : f32 to vector<16x256xf32>
    %78 = arith.cmpf olt, %61, %77 : vector<16x256xf32>
    %cst_36 = arith.constant 0.000000e+00 : f32
    %79 = vector.broadcast %cst_36 : f32 to vector<16x256xf32>
    %80 = arith.select %78, %59, %79 : vector<16x256xi1>, vector<16x256xf32>
    %81 = arith.addf %76, %80 : vector<16x256xf32>
    %c48 = arith.constant 48 : index
    %c0_37 = arith.constant 0 : index
    %82 = vector.load %arg6[%c48, %c0_37] : memref<64x256xf32, #tpu.memory_space<vmem>>, vector<16x256xf32>
    tpu.vector_store %arg6[%c48, %c0_37], %81 {strides = array<i32>} : memref<64x256xf32, #tpu.memory_space<vmem>>, vector<16x256xf32>,
    return
  }
  func.func @transform_0(%arg0: i32) -> (i32, i32) {
    %c0_i32 = arith.constant 0 : i32
    %c0_i32_0 = arith.constant 0 : i32
    %c0_i32_1 = arith.constant 0 : i32
    return %c0_i32, %c0_i32_0 : i32, i32
  }
  func.func @transform_1(%arg0: i32) -> (i32, i32) {
    %c0_i32 = arith.constant 0 : i32
    %c0_i32_0 = arith.constant 0 : i32
    %c0_i32_1 = arith.constant 0 : i32
    return %c0_i32, %c0_i32_0 : i32, i32
  }
  func.func @transform_2(%arg0: i32) -> (i32, i32) {
    %c0_i32 = arith.constant 0 : i32
    %c0_i32_0 = arith.constant 0 : i32
    %c0_i32_1 = arith.constant 0 : i32
    return %c0_i32, %c0_i32_0 : i32, i32
  }
  func.func @transform_3(%arg0: i32) -> (i32, i32) {
    %c0_i32 = arith.constant 0 : i32
    %c0_i32_0 = arith.constant 0 : i32
    %c0_i32_1 = arith.constant 0 : i32
    return %c0_i32, %c0_i32_0 : i32, i32
  }
  func.func @transform_4(%arg0: i32) -> (i32, i32) {
    %c0_i32 = arith.constant 0 : i32
    %c0_i32_0 = arith.constant 0 : i32
    return %arg0, %c0_i32 : i32, i32
  }
  func.func @transform_5(%arg0: i32) -> (i32, i32) {
    %c0_i32 = arith.constant 0 : i32
    %c0_i32_0 = arith.constant 0 : i32
    return %arg0, %c0_i32 : i32, i32
  }
}

</mosaic_0001>

<bundles_post_ra>
// kernel: tpu_custom_call.1
= control target key start
LH: loop header
LB: loop body
LE: loop exit
PB: predicated region body
PF: predicated region fallthrough
CT: control target
= control target key end

     0   :  { %s1687_s0 = inlined_call_operand.vmem [shape: f32[64,64], index: 0, kind: input, shape index: {}]   ;;  %s1688_s1 = inlined_call_operand.vmem [shape: f32[64,1], index: 1, kind: input, shape index: {}]   ;;  %s1689_s2 = inlined_call_operand.vmem [shape: f32[64,1], index: 2, kind: input, shape index: {}]   ;;  %s1690_s3 = inlined_call_operand.vmem [shape: f32[64,1], index: 3, kind: input, shape index: {}]   ;;  %s1691_s4 = inlined_call_operand.vmem [shape: f32[64,256], index: 4, kind: input, shape index: {}]   ;;  %s1692_s5 = inlined_call_operand.hbm [shape: f32[64,256], index: 5, kind: output, shape index: {}]  }
   0x1   :  { %v1219_v0 = vld [vmem:[%s1691_s4 + $0x20] sm:$0xff]  ;;  %v1224_v1 = vld [vmem:[%s1691_s4 + $0x28] sm:$0xff]  ;;  %v1241_v5 = vld [vmem:[%s1691_s4 + $0x30] sm:$0xff] }
   0x2   :  { %v1229_v2 = vld [vmem:[%s1691_s4] sm:$0xff]  ;;  %v51_v3 = vadd.f32 %v1224_v1, %v1219_v0  ;;  %v1236_v4 = vld [vmem:[%s1691_s4 + $0x8] sm:$0xff]  ;;  %v1246_v6 = vld [vmem:[%s1691_s4 + $0x38] sm:$0xff] }
   0x3   :  { %v45_v7 = vadd.f32 %v1236_v4, %v1229_v2  ;;  %v1253_v8 = vld [vmem:[%s1691_s4 + $0x10] sm:$0xff]  ;;  %v1258_v9 = vld [vmem:[%s1691_s4 + $0x18] sm:$0xff]  ;;  %v54_v10 = vadd.f32 %v1246_v6, %v1241_v5  ;;  %v1277_v14 = vld [vmem:[%s1691_s4 + $0x40] sm:$0xff] }
   0x4   :  { %52 = vadd.xlane.f32.xlu1 %v51_v3  ;;  %v48_v11 = vadd.f32 %v1258_v9, %v1253_v8  ;;  %v1267_v12 = vld [vmem:[%s1691_s4 + $0x50] sm:$0xff]  ;;  %v1272_v13 = vld [vmem:[%s1691_s4 + $0x58] sm:$0xff]  ;;  %v1282_v15 = vld [vmem:[%s1691_s4 + $0x48] sm:$0xff] }
   0x5   :  { %46 = vadd.xlane.f32.xlu0 %v45_v7 }
   0x6   :  { %10 = vsyncpa [#allocation3], 0  ;;  %v60_v16 = vadd.f32 %v1272_v13, %v1267_v12  ;;  %v57_v17 = vadd.f32 %v1282_v15, %v1277_v14  ;;  %v1291_v18 = vld [vmem:[%s1691_s4 + $0x70] sm:$0xff]  ;;  %v1296_v19 = vld [vmem:[%s1691_s4 + $0x78] sm:$0xff]  ;;  %vm69_vm0 = vcmask 523264   ;;  %v1182_v44 = vmov 0  }
   0x7   :  { %v1301_v20 = vld [vmem:[%s1691_s4 + $0x60] sm:$0xff]  ;;  %v1306_v21 = vld [vmem:[%s1691_s4 + $0x68] sm:$0xff]  ;;  %v66_v22 = vadd.f32 %v1296_v19, %v1291_v18  ;;  %v1325_v38 = vld [vmem:[%s1687_s0 + $0x10] sm:$0xff]  ;;  %1061 = vset.pattern.permute.xlu1 %v1182_v44  ;;  %1060 = vset.pattern.permute.xlu0 %v1182_v44 }
   0x8   :  { %55 = vadd.xlane.f32.xlu1 %v54_v10  ;;  %v63_v23 = vadd.f32 %v1306_v21, %v1301_v20  ;;  %v37_v24 = vld [vmem:[%s1687_s0] sm:$0xff]  ;;  %v1320_v37 = vld [vmem:[%s1687_s0 + $0x8] sm:$0xff]  ;;  %v1334_v39 = vld [vmem:[%s1687_s0 + $0x18] sm:$0xff] }
   0x9   :  { %49 = vadd.xlane.f32.xlu0 %v48_v11  ;;  %984 = vmatprep.mubr.msk.f32.mxu0 %vm69_vm0, %v37_v24  ;;  %v1339_v40 = vld [vmem:[%s1687_s0 + $0x20] sm:$0xff]  ;;  %v1348_v41 = vld [vmem:[%s1687_s0 + $0x28] sm:$0xff]  ;;  %v1353_v42 = vld [vmem:[%s1687_s0 + $0x30] sm:$0xff] }
   0xa   :  { %1012 = vmatprep.mubr.msk.f32.mxu1 %vm69_vm0, %v37_v24  ;;  %v1362_v43 = vld [vmem:[%s1687_s0 + $0x38] sm:$0xff] }
   0xc   :  { %61 = vadd.xlane.f32.xlu1 %v60_v16 }
   0xd   :  { %58 = vadd.xlane.f32.xlu0 %v57_v17 }
  0x10   :  { %67 = vadd.xlane.f32.xlu1 %v66_v22 }
  0x11   :  { %64 = vadd.xlane.f32.xlu0 %v63_v23 }
  0x91   :  { %v53_v25 = vpop.xlane.xlu1 %52 }
  0x92   :  { %v47_v26 = vpop.xlane.xlu0 %46 }
  0x95   :  { %v56_v27 = vpop.xlane.xlu1 %55 }
  0x96   :  { %v50_v28 = vpop.xlane.xlu0 %49  ;;  %v1028_v30 = vpack.c.bf16 %v56_v27, %v53_v25 }
  0x97   :  { %v1024_v29 = vpack.c.bf16 %v50_v28, %v47_v26 }
  0x99   :  { %1025 = vmatprep.subr.bf16.mxu0 %v1024_v29  ;;  %v62_v31 = vpop.xlane.xlu1 %61 }
  0x9a   :  { %1027 = vmatpush3.bf16.msra.mxu0 %v1024_v29  ;;  %v59_v32 = vpop.xlane.xlu0 %58 }
  0x9b   :  { %1029 = vmatprep.subr.bf16.mxu0 %v1028_v30  ;;  %v1032_v33 = vpack.c.bf16 %v62_v31, %v59_v32 }
  0x9d   :  { %v68_v34 = vpop.xlane.xlu1 %67 }
  0x9e   :  { %1031 = vmatpush3.bf16.msra.mxu0 %v1028_v30  ;;  %v65_v35 = vpop.xlane.xlu0 %64 }
  0x9f   :  { %1033 = vmatprep.subr.bf16.mxu0 %v1032_v33  ;;  %v1036_v36 = vpack.c.bf16 %v68_v34, %v65_v35 }
  0xa2   :  { %1035 = vmatpush3.bf16.msra.mxu0 %v1032_v33 }
  0xa3   :  { %1037 = vmatprep.subr.bf16.mxu0 %v1036_v36 }
  0xa6   :  { %1039 = vmatpush3.bf16.msra.mxu0 %v1036_v36 }
  0xa9   :  { %985 = vmatmul.mubr.msk.f32.vlgmr.msra.gmra.mrb[0].mxu0 %vm69_vm0, %v1320_v37 }
  0xaa   :  { %987 = vmatprep.mubr.msk.f32.mxu0 %vm69_vm0, %v1325_v38 }
  0xad   :  { %988 = vmatmul.mubr.msk.f32.gmra.mrb[2].mxu0 %vm69_vm0, %v1334_v39 }
  0xae   :  { %990 = vmatprep.mubr.msk.f32.mxu0 %vm69_vm0, %v1339_v40 }
  0xb1   :  { %991 = vmatmul.mubr.msk.f32.gmra.mrb[4].mxu0 %vm69_vm0, %v1348_v41 }
  0xb2   :  { %993 = vmatprep.mubr.msk.f32.mxu0 %vm69_vm0, %v1353_v42 }
  0xb5   :  { %994 = vmatmul.mubr.msk.f32.gmra.mrb[6].mxu0 %vm69_vm0, %v1362_v43 }
 0x17c   :  { %v986_v45 = vpop.f32.mrb[0].mxu0 }
 0x17d   :  { %v200_v46 = vmul.f32 0.001953125, %v986_v45  ;;  %v160_v47 = vpop.f32.mrb[1].mxu0 }
 0x17e   :  { %v199_v48 = vmul.f32 0.001953125, %v160_v47 }
 0x17f   :  { %214 = vperm.xlu1 %1061, %v200_v46  }
 0x180   :  { %209 = vperm.xlu0 %1060, %v199_v48   ;;  %v989_v49 = vpop.f32.mrb[2].mxu0 }
 0x181   :  { %v202_v50 = vmul.f32 0.001953125, %v989_v49  ;;  %v170_v51 = vpop.f32.mrb[3].mxu0 }
 0x182   :  { %v201_v53 = vmul.f32 0.001953125, %v170_v51 }
 0x183   :  { %224 = vperm.xlu1 %1061, %v202_v50  }
 0x184   :  { %v992_v52 = vpop.f32.mrb[4].mxu0 }
 0x185   :  { %v180_v54 = vpop.f32.mrb[5].mxu0  ;;  %v204_v55 = vmul.f32 0.001953125, %v992_v52 }
 0x186   :  { %v203_v58 = vmul.f32 0.001953125, %v180_v54  ;;  %v568_v54 = vld [vmem:[%s1689_s2] sm:$0xff] }
 0x187   :  { %219 = vperm.xlu1 %1061, %v201_v53  }
 0x188   :  { %v995_v56 = vpop.f32.mrb[6].mxu0 }
 0x189   :  { %v190_v57 = vpop.f32.mrb[7].mxu0  ;;  %v206_v60 = vmul.f32 0.001953125, %v995_v56  ;;  %v572_v56 = vld [vmem:[%s1689_s2 + $0x20] sm:$0xff] }
 0x18a   :  { %v205_v59 = vmul.f32 0.001953125, %v190_v57  ;;  %v573_v57 = vld [vmem:[%s1689_s2 + $0x28] sm:$0xff] }
 0x18b   :  { %234 = vperm.xlu1 %1061, %v204_v55   ;;  %v571_v55 = vld [vmem:[%s1689_s2 + $0x18] sm:$0xff] }
 0x18f   :  { %229 = vperm.xlu1 %1061, %v203_v58   ;;  %v574_v58 = vld [vmem:[%s1689_s2 + $0x30] sm:$0xff] }
 0x193   :  { %239 = vperm.xlu1 %1061, %v205_v59   ;;  %v575_v59 = vld [vmem:[%s1689_s2 + $0x38] sm:$0xff] }
 0x197   :  { %244 = vperm.xlu1 %1061, %v206_v60   ;;  %v632_v60 = vld [vmem:[%s1690_s3] sm:$0xff] }
 0x1fe   :  { %v215_v61 = vpop.permute.xlu1 %214 }
 0x1ff   :  { %v1367_v62 = vsub.f32 %v1253_v8, %v215_v61  ;;  %v1370_v63 = vsub.f32 %v1258_v9, %v215_v61  ;;  %v210_v3 = vpop.permute.xlu0 %209  ;;  %v633_v61 = vld [vmem:[%s1690_s3 + $0x8] sm:$0xff] }
 0x200   :  { %v1373_v7 = vsub.f32 %v1229_v2, %v210_v3  ;;  %v1376_v10 = vsub.f32 %v1236_v4, %v210_v3  ;;  %v634_v3 = vld [vmem:[%s1690_s3 + $0x10] sm:$0xff] }
 0x201   :  { %v265_v11 = vmul.f32 %v1367_v62, %v1367_v62  ;;  %v266_v16 = vmul.f32 %v1370_v63, %v1370_v63 }
 0x202   :  { %v225_v17 = vpop.permute.xlu1 %224  ;;  %v263_v8 = vmul.f32 %v1373_v7, %v1373_v7  ;;  %v264_v9 = vmul.f32 %v1376_v10, %v1376_v10 }
 0x203   :  { %v1387_v22 = vsub.f32 %v1241_v5, %v225_v17  ;;  %v1390_v2 = vsub.f32 %v1246_v6, %v225_v17  ;;  %v282_v4 = vadd.f32 %v266_v16, %v265_v11  ;;  %v635_v11 = vld [vmem:[%s1690_s3 + $0x18] sm:$0xff]  ;;  %v636_v16 = vld [vmem:[%s1690_s3 + $0x20] sm:$0xff]  ;;  %v637_v17 = vld [vmem:[%s1690_s3 + $0x28] sm:$0xff] }
 0x204   :  { %v279_v23 = vadd.f32 %v264_v9, %v263_v8 }
 0x205   :  { %283 = vadd.xlane.f32.xlu0 %v282_v4  ;;  %v269_v24 = vmul.f32 %v1387_v22, %v1387_v22  ;;  %v270_v25 = vmul.f32 %v1390_v2, %v1390_v2 }
 0x206   :  { %v220_v26 = vpop.permute.xlu1 %219  ;;  %280 = vadd.xlane.f32.xlu1 %v279_v23 }
 0x207   :  { %v1397_v27 = vsub.f32 %v1219_v0, %v220_v26  ;;  %v1400_v5 = vsub.f32 %v1224_v1, %v220_v26  ;;  %v288_v28 = vadd.f32 %v270_v25, %v269_v24 }
 0x209   :  { %v267_v6 = vmul.f32 %v1397_v27, %v1397_v27  ;;  %v268_v29 = vmul.f32 %v1400_v5, %v1400_v5 }
 0x20a   :  { %v235_v30 = vpop.permute.xlu1 %234  ;;  %289 = vadd.xlane.f32.xlu1 %v288_v28 }
 0x20b   :  { %v1407_v31 = vsub.f32 %v1267_v12, %v235_v30  ;;  %v1410_v32 = vsub.f32 %v1272_v13, %v235_v30  ;;  %v285_v0 = vadd.f32 %v268_v29, %v267_v6 }
 0x20d   :  { %286 = vadd.xlane.f32.xlu0 %v285_v0  ;;  %v273_v1 = vmul.f32 %v1407_v31, %v1407_v31  ;;  %v274_v33 = vmul.f32 %v1410_v32, %v1410_v32 }
 0x20e   :  { %v230_v34 = vpop.permute.xlu1 %229 }
 0x20f   :  { %v1417_v35 = vsub.f32 %v1277_v14, %v230_v34  ;;  %v1420_v36 = vsub.f32 %v1282_v15, %v230_v34  ;;  %v294_v12 = vadd.f32 %v274_v33, %v273_v1 }
 0x211   :  { %295 = vadd.xlane.f32.xlu1 %v294_v12  ;;  %v271_v13 = vmul.f32 %v1417_v35, %v1417_v35  ;;  %v272_v44 = vmul.f32 %v1420_v36, %v1420_v36 }
 0x212   :  { %v240_v45 = vpop.permute.xlu1 %239 }
 0x213   :  { %v1427_v46 = vsub.f32 %v1301_v20, %v240_v45  ;;  %v1430_v47 = vsub.f32 %v1306_v21, %v240_v45  ;;  %v291_v14 = vadd.f32 %v272_v44, %v271_v13 }
 0x215   :  { %292 = vadd.xlane.f32.xlu0 %v291_v14  ;;  %v275_v15 = vmul.f32 %v1427_v46, %v1427_v46  ;;  %v276_v48 = vmul.f32 %v1430_v47, %v1430_v47 }
 0x216   :  { %v245_v49 = vpop.permute.xlu1 %244 }
 0x217   :  { %v1437_v50 = vsub.f32 %v1291_v18, %v245_v49  ;;  %v1440_v51 = vsub.f32 %v1296_v19, %v245_v49  ;;  %v297_v20 = vadd.f32 %v276_v48, %v275_v15  ;;  %v569_v18 = vld [vmem:[%s1689_s2 + $0x8] sm:$0xff]  ;;  %v570_v19 = vld [vmem:[%s1689_s2 + $0x10] sm:$0xff] }
 0x219   :  { %298 = vadd.xlane.f32.xlu0 %v297_v20  ;;  %v277_v21 = vmul.f32 %v1437_v50, %v1437_v50  ;;  %v278_v52 = vmul.f32 %v1440_v51, %v1440_v51 }
 0x21b   :  { %v300_v53 = vadd.f32 %v278_v52, %v277_v21 }
 0x21d   :  { %301 = vadd.xlane.f32.xlu1 %v300_v53 }
 0x22e   :  { %578 = vperm.xlu1 %1061, %v568_v54  }
 0x22f   :  { %583 = vperm.xlu0 %1060, %v569_v18  }
 0x232   :  { %588 = vperm.xlu1 %1061, %v570_v19  }
 0x233   :  { %593 = vperm.xlu0 %1060, %v571_v55  }
 0x236   :  { %598 = vperm.xlu1 %1061, %v572_v56  }
 0x237   :  { %603 = vperm.xlu0 %1060, %v573_v57  }
 0x23a   :  { %608 = vperm.xlu1 %1061, %v574_v58  }
 0x23b   :  { %613 = vperm.xlu0 %1060, %v575_v59  }
 0x23e   :  { %642 = vperm.xlu1 %1061, %v632_v60  }
 0x23f   :  { %647 = vperm.xlu0 %1060, %v633_v61  }
 0x242   :  { %652 = vperm.xlu1 %1061, %v634_v3  }
 0x243   :  { %657 = vperm.xlu0 %1060, %v635_v11  }
 0x246   :  { %662 = vperm.xlu1 %1061, %v636_v16  }
 0x247   :  { %667 = vperm.xlu0 %1060, %v637_v17  }
 0x292   :  { %v284_v8 = vpop.xlane.xlu0 %283 }
 0x293   :  { %v281_v9 = vpop.xlane.xlu1 %280 }
 0x294   :  { %v1040_v4 = vpack.c.bf16 %v284_v8, %v281_v9 }
 0x296   :  { %1041 = vmatprep.subr.bf16.mxu1 %v1040_v4 }
 0x297   :  { %1043 = vmatpush3.bf16.msra.mxu1 %v1040_v4  ;;  %v290_v23 = vpop.xlane.xlu1 %289 }
 0x29a   :  { %v287_v24 = vpop.xlane.xlu0 %286 }
 0x29b   :  { %v1044_v25 = vpack.c.bf16 %v290_v23, %v287_v24 }
 0x29d   :  { %1045 = vmatprep.subr.bf16.mxu1 %v1044_v25 }
 0x29e   :  { %1047 = vmatpush3.bf16.msra.mxu1 %v1044_v25  ;;  %v296_v26 = vpop.xlane.xlu1 %295 }
 0x2a2   :  { %v293_v28 = vpop.xlane.xlu0 %292 }
 0x2a3   :  { %v1048_v6 = vpack.c.bf16 %v296_v26, %v293_v28 }
 0x2a5   :  { %1049 = vmatprep.subr.bf16.mxu1 %v1048_v6 }
 0x2a6   :  { %1051 = vmatpush3.bf16.msra.mxu1 %v1048_v6  ;;  %v299_v29 = vpop.xlane.xlu0 %298 }
 0x2aa   :  { %v302_v30 = vpop.xlane.xlu1 %301 }
 0x2ab   :  { %v1052_v0 = vpack.c.bf16 %v302_v30, %v299_v29 }
 0x2ad   :  { %1053 = vmatprep.subr.bf16.mxu1 %v1052_v0 }
 0x2ae   :  { %1055 = vmatpush3.bf16.msra.mxu1 %v1052_v0 }
 0x2b1   :  { %1013 = vmatmul.mubr.msk.f32.vlgmr.msra.gmra.mrb[0].mxu1 %vm69_vm0, %v1320_v37 }
 0x2b2   :  { %1015 = vmatprep.mubr.msk.f32.mxu1 %vm69_vm0, %v1325_v38 }
 0x2b5   :  { %1016 = vmatmul.mubr.msk.f32.gmra.mrb[2].mxu1 %vm69_vm0, %v1334_v39 }
 0x2b6   :  { %1018 = vmatprep.mubr.msk.f32.mxu1 %vm69_vm0, %v1339_v40 }
 0x2b9   :  { %1019 = vmatmul.mubr.msk.f32.gmra.mrb[4].mxu1 %vm69_vm0, %v1348_v41 }
 0x2ba   :  { %1021 = vmatprep.mubr.msk.f32.mxu1 %vm69_vm0, %v1353_v42 }
 0x2bd   :  { %1022 = vmatmul.mubr.msk.f32.gmra.mrb[6].mxu1 %vm69_vm0, %v1362_v43 }
 0x384   :  { %v1014_v1 = vpop.f32.mrb[0].mxu1 }
 0x385   :  { %v409_v37 = vmul.f32 0.0019569471, %v1014_v1  ;;  %v369_v33 = vpop.f32.mrb[1].mxu1 }
 0x386   :  { %v408_v34 = vmul.f32 0.0019569471, %v369_v33 }
 0x387   :  { %v417_v38 = vmax.f32 %v409_v37, 0.0 }
 0x388   :  { %v416_v12 = vmax.f32 %v408_v34, 0.0  ;;  %v1017_v13 = vpop.f32.mrb[2].mxu1 }
 0x389   :  { %1062 = vrsqrt.f32 %v417_v38  ;;  %v411_v39 = vmul.f32 0.0019569471, %v1017_v13  ;;  %v379_v44 = vpop.f32.mrb[3].mxu1  ;;  %vm433_vm1 = vcmp.eq.f32.partialorder %v417_v38, inf  ;;  %v436_v57 = vand.u32 2147483648, %v417_v38 }
 0x38a   :  { %1064 = vrsqrt.f32 %v416_v12  ;;  %v410_v40 = vmul.f32 0.0019569471, %v379_v44  ;;  %vm426_vm2 = vcmp.eq.f32.partialorder %v416_v12, inf  ;;  %v429_v59 = vand.u32 2147483648, %v416_v12 }
 0x38b   :  { %v419_v45 = vmax.f32 %v411_v39, 0.0  ;;  %vm435_vm3 = vcmp.eq.f32.partialorder %v417_v38, 0.0  ;;  %vm428_vm4 = vcmp.eq.f32.partialorder %v416_v12, 0.0 }
 0x38c   :  { %v418_v41 = vmax.f32 %v410_v40, 0.0  ;;  %v1020_v14 = vpop.f32.mrb[4].mxu1 }
 0x38d   :  { %1066 = vrsqrt.f32 %v419_v45  ;;  %v413_v42 = vmul.f32 0.0019569471, %v1020_v14  ;;  %v389_v15 = vpop.f32.mrb[5].mxu1  ;;  %vm447_vm5 = vcmp.eq.f32.partialorder %v419_v45, inf  ;;  %v450_v4 = vand.u32 2147483648, %v419_v45 }
 0x38e   :  { %1068 = vrsqrt.f32 %v418_v41  ;;  %v412_v43 = vmul.f32 0.0019569471, %v389_v15  ;;  %vm440_vm6 = vcmp.eq.f32.partialorder %v418_v41, inf  ;;  %v443_v25 = vand.u32 2147483648, %v418_v41 }
 0x38f   :  { %v421_v48 = vmax.f32 %v413_v42, 0.0  ;;  %vm449_vm7 = vcmp.eq.f32.partialorder %v419_v45, 0.0  ;;  %vm442_vm8 = vcmp.eq.f32.partialorder %v418_v41, 0.0 }
 0x390   :  { %v1502_v49 = vmax.f32 %v412_v43, 0.0  ;;  %v1023_v20 = vpop.f32.mrb[6].mxu1 }
 0x391   :  { %1070 = vrsqrt.f32 %v421_v48  ;;  %v415_v21 = vmul.f32 0.0019569471, %v1023_v20  ;;  %v399_v52 = vpop.f32.mrb[7].mxu1  ;;  %vm461_vm9 = vcmp.eq.f32.partialorder %v421_v48, inf  ;;  %v464_v33 = vand.u32 2147483648, %v421_v48 }
 0x392   :  { %1072 = vrsqrt.f32 %v1502_v49  ;;  %v414_v53 = vmul.f32 0.0019569471, %v399_v52  ;;  %vm454_vm10 = vcmp.eq.f32.partialorder %v1502_v49, inf  ;;  %vm463_vm11 = vcmp.eq.f32.partialorder %v421_v48, 0.0  ;;  %v480_v52 = vld [vmem:[%s1688_s1] sm:$0xff] }
 0x393   :  { %v1063_v54 = vpop.eup %1062  ;;  %v1505_v18 = vmax.f32 %v415_v21, 0.0  ;;  %vm456_vm12 = vcmp.eq.f32.partialorder %v1502_v49, 0.0 }
 0x394   :  { %v1065_v19 = vpop.eup %1064  ;;  %v432_v55 = vmul.f32 %v1063_v54, %v417_v38  ;;  %v1507_v56 = vmax.f32 %v414_v53, 0.0 }
 0x395   :  { %v425_v58 = vmul.f32 %v1065_v19, %v416_v12  ;;  %1074 = vrsqrt.f32 %v1505_v18  ;;  %vm475_vm13 = vcmp.eq.f32.partialorder %v1505_v18, inf  ;;  %v478_v15 = vand.u32 2147483648, %v1505_v18 }
 0x396   :  { %1076 = vrsqrt.f32 %v1507_v56  ;;  %v434_v60 = vsel %vm433_vm1, %v417_v38, %v432_v55  ;;  %vm468_vm14 = vcmp.eq.f32.partialorder %v1507_v56, inf  ;;  %v471_v20 = vand.u32 2147483648, %v1507_v56 }
 0x397   :  { %v1067_v61 = vpop.eup %1066  ;;  %v437_v3 = vsel %vm435_vm3, %v436_v57, %v434_v60  ;;  %v427_v11 = vsel %vm426_vm2, %v416_v12, %v425_v58  ;;  %v457_v12 = vand.u32 2147483648, %v1502_v49  ;;  %vm477_vm15 = vcmp.eq.f32.partialorder %v1505_v18, 0.0 }
 0x398   :  { %v1069_v16 = vpop.eup %1068  ;;  %v446_v17 = vmul.f32 %v1067_v61, %v419_v45  ;;  %v489_v8 = vadd.f32 1e-10, %v437_v3  ;;  %v430_v9 = vsel %vm428_vm4, %v429_v59, %v427_v11  ;;  %vm470_vm0 = vcmp.eq.f32.partialorder %v1507_v56, 0.0  ;;  %v482_v3 = vld [vmem:[%s1688_s1 + $0x10] sm:$0xff] }
 0x399   :  { %v439_v23 = vmul.f32 %v1069_v16, %v418_v41  ;;  %v488_v24 = vadd.f32 1e-10, %v430_v9  ;;  %v484_v9 = vld [vmem:[%s1688_s1 + $0x20] sm:$0xff] }
 0x39a   :  { %1078 = vrcp.f32 %v489_v8  ;;  %v448_v26 = vsel %vm447_vm5, %v419_v45, %v446_v17  ;;  %v485_v8 = vld [vmem:[%s1688_s1 + $0x28] sm:$0xff] }
 0x39b   :  { %v1071_v28 = vpop.eup %1070  ;;  %1080 = vrcp.f32 %v488_v24  ;;  %v451_v6 = vsel %vm449_vm7, %v450_v4, %v448_v26  ;;  %v441_v29 = vsel %vm440_vm6, %v418_v41, %v439_v23  ;;  %v487_v26 = vld [vmem:[%s1688_s1 + $0x38] sm:$0xff] }
 0x39c   :  { %v1073_v30 = vpop.eup %1072  ;;  %v460_v0 = vmul.f32 %v1071_v28, %v421_v48  ;;  %v491_v1 = vadd.f32 1e-10, %v451_v6  ;;  %v444_v37 = vsel %vm442_vm8, %v443_v25, %v441_v29  ;;  %v486_v28 = vld [vmem:[%s1688_s1 + $0x30] sm:$0xff] }
 0x39d   :  { %v453_v34 = vmul.f32 %v1073_v30, %v1502_v49  ;;  %v490_v38 = vadd.f32 1e-10, %v444_v37  ;;  %v638_v37 = vld [vmem:[%s1690_s3 + $0x30] sm:$0xff] }
 0x39e   :  { %1082 = vrcp.f32 %v491_v1  ;;  %v462_v13 = vsel %vm461_vm9, %v421_v48, %v460_v0  ;;  %v639_v1 = vld [vmem:[%s1690_s3 + $0x38] sm:$0xff] }
 0x39f   :  { %v1075_v39 = vpop.eup %1074  ;;  %1084 = vrcp.f32 %v490_v38  ;;  %v465_v44 = vsel %vm463_vm11, %v464_v33, %v462_v13  ;;  %v455_v40 = vsel %vm454_vm10, %v1502_v49, %v453_v34  ;;  %v481_v49 = vld [vmem:[%s1688_s1 + $0x8] sm:$0xff]  ;;  %v579_v33 = vpop.permute.xlu1 %578 }
 0x3a0   :  { %v1077_v45 = vpop.eup %1076  ;;  %v474_v41 = vmul.f32 %v1075_v39, %v1505_v18  ;;  %v493_v14 = vadd.f32 1e-10, %v465_v44  ;;  %v458_v42 = vsel %vm456_vm12, %v457_v12, %v455_v40  ;;  %v584_v34 = vpop.permute.xlu0 %583 }
 0x3a1   :  { %v467_v43 = vmul.f32 %v1077_v45, %v1507_v56  ;;  %v492_v48 = vadd.f32 1e-10, %v458_v42 }
 0x3a2   :  { %1086 = vrcp.f32 %v493_v14  ;;  %v476_v21 = vsel %vm475_vm13, %v1505_v18, %v474_v41  ;;  %v483_v18 = vld [vmem:[%s1688_s1 + $0x18] sm:$0xff]  ;;  %s1183_s1 = smov [#allocation2]  }
 0x3a3   :  { %1088 = vrcp.f32 %v492_v48  ;;  %v479_v53 = vsel %vm477_vm15, %v478_v15, %v476_v21  ;;  %v469_v54 = vsel %vm468_vm14, %v1507_v56, %v467_v43  ;;  %v589_v38 = vpop.permute.xlu1 %588  ;;  %s893_s3 = sshll.u32 %s1183_s1, 4  ;;  %s894_s3 = int_to_ptr.vmem [resolvable:$true] %s893_s3 }
 0x3a4   :  { %v1079_v19 = vpop.eup %1078  ;;  %v495_v55 = vadd.f32 1e-10, %v479_v53  ;;  %v472_v57 = vsel %vm470_vm0, %v471_v20, %v469_v54  ;;  %v594_v12 = vpop.permute.xlu0 %593  ;;  %s1158_s8 = scalar_lea.vmem %s894_s3, 2048  ;;  %p1163_p1 = scmp.lt.s32.totalorder %s894_s3, %s894_s3 }
 0x3a5   :  { %v1081_v58 = vpop.eup %1080  ;;  %v499_v59 = vmul.f32 %v1079_v19, %v481_v49  ;;  %v494_v60 = vadd.f32 1e-10, %v472_v57  ;;  %p1159_p0 = scmp.ne.s32.totalorder %s894_s3, %s1158_s8  ;;  %p1164_p2 = scmp.lt.s32.totalorder %s1158_s8, %s1158_s8 }
 0x3a6   :  { %v497_v61 = vmul.f32 %v1081_v58, %v480_v52  ;;  %1090 = vrcp.f32 %v495_v55 }
 0x3a7   :  { %519 = vperm.xlu1 %1061, %v499_v59   ;;  %1092 = vrcp.f32 %v494_v60  ;;  %v1556_v13 = vpop.permute.xlu1 %598  ;;  %p1165_p3 = por %p1164_p2, %p1163_p1 }
 0x3a8   :  { %v1083_v11 = vpop.eup %1082  ;;  %514 = vperm.xlu0 %1060, %v497_v61   ;;  %v604_v39 = vpop.permute.xlu0 %603 }
 0x3a9   :  { %v1085_v56 = vpop.eup %1084  ;;  %v503_v16 = vmul.f32 %v1083_v11, %v483_v18  ;;  %p1166_p4 = pnand %p1165_p3, %p1159_p0 }
 0x3aa   :  { %v501_v17 = vmul.f32 %v1085_v56, %v482_v3 }
 0x3ab   :  { %v1558_v44 = vpop.permute.xlu1 %608 }
 0x3ac   :  { %v1087_v4 = vpop.eup %1086  ;;  %529 = vperm.xlu0 %1060, %v503_v16   ;;  %524 = vperm.xlu1 %1061, %v501_v17   ;;  %v1560_v40 = vpop.permute.xlu0 %613 }
 0x3ad   :  { %v1089_v23 = vpop.eup %1088  ;;  %v507_v24 = vmul.f32 %v1087_v4, %v485_v8 }
 0x3ae   :  { %v505_v25 = vmul.f32 %v1089_v23, %v484_v9 }
 0x3af   :  { %v643_v45 = vpop.permute.xlu1 %642 }
 0x3b0   :  { %v1091_v6 = vpop.eup %1090  ;;  %539 = vperm.xlu0 %1060, %v507_v24   ;;  %534 = vperm.xlu1 %1061, %v505_v25   ;;  %v648_v41 = vpop.permute.xlu0 %647 }
 0x3b1   :  { %v1093_v29 = vpop.eup %1092  ;;  %v511_v30 = vmul.f32 %v1091_v6, %v487_v26 }
 0x3b2   :  { %v509_v0 = vmul.f32 %v1093_v29, %v486_v28 }
 0x3b3   :  { %v653_v14 = vpop.permute.xlu1 %652 }
 0x3b4   :  { %549 = vperm.xlu0 %1060, %v511_v30   ;;  %544 = vperm.xlu1 %1061, %v509_v0   ;;  %v658_v42 = vpop.permute.xlu0 %657 }
 0x3b7   :  { %v1562_v15 = vpop.permute.xlu1 %662 }
 0x3b8   :  { %677 = vperm.xlu0 %1060, %v639_v1   ;;  %672 = vperm.xlu1 %1061, %v638_v37   ;;  %v668_v43 = vpop.permute.xlu0 %667 }
 0x426   :  { %v520_v48 = vpop.permute.xlu1 %519 }
 0x427   :  { %v554_v20 = vmul.f32 %v520_v48, %v1367_v62  ;;  %v555_v49 = vmul.f32 %v520_v48, %v1370_v63  ;;  %v515_v21 = vpop.permute.xlu0 %514 }
 0x428   :  { %v552_v52 = vmul.f32 %v515_v21, %v1373_v7  ;;  %v553_v53 = vmul.f32 %v515_v21, %v1376_v10 }
 0x429   :  { %v1568_v54 = vadd.f32 %v584_v34, %v554_v20  ;;  %v1570_v19 = vadd.f32 %v584_v34, %v555_v49 }
 0x42a   :  { %v1572_v55 = vadd.f32 %v579_v33, %v552_v52  ;;  %v1574_v57 = vadd.f32 %v579_v33, %v553_v53 }
 0x42b   :  { %v682_v58 = vmul.f32 %v648_v41, %v1568_v54  ;;  %v683_v59 = vmul.f32 %v648_v41, %v1570_v19  ;;  %v530_v62 = vpop.permute.xlu0 %529  ;;  %v525_v60 = vpop.permute.xlu1 %524 }
 0x42c   :  { %v680_v63 = vmul.f32 %v643_v45, %v1572_v55  ;;  %v681_v7 = vmul.f32 %v643_v45, %v1574_v57  ;;  %v558_v10 = vmul.f32 %v530_v62, %v1387_v22  ;;  %v559_v61 = vmul.f32 %v530_v62, %v1390_v2 }
 0x42d   :  { %v922_v18 = vmul.f32 -1.442695, %v682_v58  ;;  %v923_v3 = vmul.f32 -1.442695, %v683_v59  ;;  %v556_v11 = vmul.f32 %v525_v60, %v1397_v27  ;;  %v557_v56 = vmul.f32 %v525_v60, %v1400_v5 }
 0x42e   :  { %v920_v16 = vmul.f32 -1.442695, %v680_v63  ;;  %v921_v17 = vmul.f32 -1.442695, %v681_v7  ;;  %v1584_v8 = vadd.f32 %v594_v12, %v558_v10  ;;  %v1586_v9 = vadd.f32 %v594_v12, %v559_v61 }
 0x42f   :  { %1094 = vpow2.f32 %v922_v18  ;;  %v1588_v4 = vadd.f32 %v589_v38, %v556_v11  ;;  %v1590_v23 = vadd.f32 %v589_v38, %v557_v56  ;;  %v540_v22 = vpop.permute.xlu0 %539  ;;  %v535_v30 = vpop.permute.xlu1 %534 }
 0x430   :  { %1096 = vpow2.f32 %v923_v3  ;;  %v686_v2 = vmul.f32 %v658_v42, %v1584_v8  ;;  %v687_v24 = vmul.f32 %v658_v42, %v1586_v9  ;;  %v562_v27 = vmul.f32 %v540_v22, %v1407_v31 }
 0x431   :  { %1098 = vpow2.f32 %v920_v16  ;;  %v684_v5 = vmul.f32 %v653_v14, %v1588_v4  ;;  %v685_v25 = vmul.f32 %v653_v14, %v1590_v23  ;;  %v563_v26 = vmul.f32 %v540_v22, %v1410_v32 }
 0x432   :  { %1100 = vpow2.f32 %v921_v17  ;;  %v926_v28 = vmul.f32 -1.442695, %v686_v2  ;;  %v927_v6 = vmul.f32 -1.442695, %v687_v24  ;;  %v1598_v29 = vadd.f32 %v604_v39, %v562_v27 }
 0x433   :  { %v924_v0 = vmul.f32 -1.442695, %v684_v5  ;;  %v925_v1 = vmul.f32 -1.442695, %v685_v25  ;;  %v1600_v37 = vadd.f32 %v604_v39, %v563_v26  ;;  %v550_v33 = vpop.permute.xlu0 %549  ;;  %v560_v38 = vmul.f32 %v535_v30, %v1417_v35  ;;  %v545_v39 = vpop.permute.xlu1 %544 }
 0x434   :  { %1102 = vpow2.f32 %v926_v28  ;;  %v690_v31 = vmul.f32 %v668_v43, %v1598_v29  ;;  %v566_v45 = vmul.f32 %v550_v33, %v1437_v50  ;;  %v561_v41 = vmul.f32 %v535_v30, %v1420_v36 }
 0x435   :  { %1104 = vpow2.f32 %v927_v6  ;;  %v691_v34 = vmul.f32 %v668_v43, %v1600_v37  ;;  %v1608_v42 = vadd.f32 %v1556_v13, %v560_v38  ;;  %v567_v43 = vmul.f32 %v550_v33, %v1440_v51 }
 0x436   :  { %1106 = vpow2.f32 %v924_v0  ;;  %v930_v32 = vmul.f32 -1.442695, %v690_v31  ;;  %v1612_v21 = vadd.f32 %v1560_v40, %v566_v45  ;;  %v564_v50 = vmul.f32 %v545_v39, %v1427_v46 }
 0x437   :  { %1108 = vpow2.f32 %v925_v1  ;;  %v931_v12 = vmul.f32 -1.442695, %v691_v34  ;;  %v1616_v53 = vadd.f32 %v1556_v13, %v561_v41  ;;  %v678_v58 = vpop.permute.xlu0 %677  ;;  %v688_v51 = vmul.f32 %v1562_v15, %v1608_v42  ;;  %v673_v11 = vpop.permute.xlu1 %672 }
 0x438   :  { %1110 = vpow2.f32 %v930_v32  ;;  %v1621_v60 = vadd.f32 %v1560_v40, %v567_v43  ;;  %v565_v63 = vmul.f32 %v545_v39, %v1430_v47  ;;  %v1625_v10 = vadd.f32 %v1558_v44, %v564_v50 }
 0x439   :  { %v1095_v14 = vpop.eup %1094  ;;  %1112 = vpow2.f32 %v931_v12  ;;  %v694_v13 = vmul.f32 %v678_v58, %v1612_v21  ;;  %v689_v3 = vmul.f32 %v1562_v15, %v1616_v53  ;;  %v928_v16 = vmul.f32 -1.442695, %v688_v51 }
 0x43a   :  { %v1097_v48 = vpop.eup %1096  ;;  %v746_v20 = vadd.f32 1.0, %v1095_v14  ;;  %v1631_v22 = vadd.f32 %v1558_v44, %v565_v63  ;;  %v695_v2 = vmul.f32 %v678_v58, %v1621_v60  ;;  %v692_v27 = vmul.f32 %v673_v11, %v1625_v10 }
 0x43b   :  { %v1099_v49 = vpop.eup %1098  ;;  %v747_v35 = vadd.f32 1.0, %v1097_v48  ;;  %v934_v24 = vmul.f32 -1.442695, %v694_v13  ;;  %v929_v5 = vmul.f32 -1.442695, %v689_v3 }
 0x43c   :  { %v1101_v52 = vpop.eup %1100  ;;  %1114 = vrcp.f32 %v746_v20  ;;  %v744_v36 = vadd.f32 1.0, %v1099_v49  ;;  %v935_v28 = vmul.f32 -1.442695, %v695_v2  ;;  %v1636_v6 = vmul.f32 %v673_v11, %v1631_v22 }
 0x43d   :  { %1116 = vrcp.f32 %v747_v35  ;;  %v745_v59 = vadd.f32 1.0, %v1101_v52  ;;  %v1638_v44 = vmul.f32 -1.442695, %v692_v27 }
 0x43e   :  { %v1103_v62 = vpop.eup %1102  ;;  %1118 = vrcp.f32 %v744_v36 }
 0x43f   :  { %v1105_v46 = vpop.eup %1104  ;;  %1120 = vrcp.f32 %v745_v59  ;;  %v750_v7 = vadd.f32 1.0, %v1103_v62 }
 0x440   :  { %v1107_v61 = vpop.eup %1106  ;;  %v751_v18 = vadd.f32 1.0, %v1105_v46 }
 0x441   :  { %v1109_v56 = vpop.eup %1108  ;;  %1122 = vrcp.f32 %v750_v7  ;;  %v748_v40 = vadd.f32 1.0, %v1107_v61 }
 0x442   :  { %v1111_v17 = vpop.eup %1110  ;;  %1124 = vrcp.f32 %v751_v18  ;;  %v749_v47 = vadd.f32 1.0, %v1109_v56  ;;  %v933_v18 = vmul.f32 -1.442695, %v1636_v6 }
 0x443   :  { %1126 = vrcp.f32 %v748_v40  ;;  %v1113_v15 = vpop.eup %1112  ;;  %v754_v25 = vadd.f32 1.0, %v1111_v17 }
 0x444   :  { %1128 = vrcp.f32 %v749_v47  ;;  %v755_v1 = vadd.f32 1.0, %v1113_v15 }
 0x445   :  { %1130 = vpow2.f32 %v928_v16 }
 0x446   :  { %v1115_v26 = vpop.eup %1114  ;;  %1132 = vpow2.f32 %v934_v24 }
 0x447   :  { %v1117_v30 = vpop.eup %1116  ;;  %vm794_vm1 = vcmp.ge.f32.partialorder %v1115_v26, 0.5  ;;  %vm826_vm2 = vcmp.lt.f32.partialorder %v1115_v26, 0.5  ;;  %1134 = vpow2.f32 %v929_v5 }
 0x448   :  { %v1119_v0 = vpop.eup %1118  ;;  %vm795_vm3 = vcmp.ge.f32.partialorder %v1117_v30, 0.5  ;;  %vm827_vm4 = vcmp.lt.f32.partialorder %v1117_v30, 0.5  ;;  %v798_v33 = vsel %vm794_vm1, %v1568_v54, 0.0  ;;  %1136 = vrcp.f32 %v754_v25 }
 0x449   :  { %v1121_v31 = vpop.eup %1120  ;;  %vm792_vm5 = vcmp.ge.f32.partialorder %v1119_v0, 0.5  ;;  %vm824_vm6 = vcmp.lt.f32.partialorder %v1119_v0, 0.5  ;;  %v799_v34 = vsel %vm795_vm3, %v1570_v19, 0.0  ;;  %v830_v38 = vsel %vm826_vm2, %v1568_v54, 0.0 }
 0x44a   :  { %vm793_vm7 = vcmp.ge.f32.partialorder %v1121_v31, 0.5  ;;  %vm825_vm8 = vcmp.lt.f32.partialorder %v1121_v31, 0.5  ;;  %v831_v12 = vsel %vm827_vm4, %v1570_v19, 0.0  ;;  %v796_v45 = vsel %vm792_vm5, %v1572_v55, 0.0 }
 0x44b   :  { %v1123_v32 = vpop.eup %1122  ;;  %v797_v41 = vsel %vm793_vm7, %v1574_v57, 0.0  ;;  %v828_v39 = vsel %vm824_vm6, %v1572_v55, 0.0  ;;  %v829_v48 = vsel %vm825_vm8, %v1574_v57, 0.0  ;;  %1138 = vpow2.f32 %v935_v28 }
 0x44c   :  { %v1125_v14 = vpop.eup %1124  ;;  %vm802_vm9 = vcmp.lt.f32.partialorder %v1123_v32, 0.5  ;;  %vm818_vm10 = vcmp.ge.f32.partialorder %v1123_v32, 0.5  ;;  %1140 = vrcp.f32 %v755_v1 }
 0x44d   :  { %v1127_v20 = vpop.eup %1126  ;;  %vm803_vm11 = vcmp.lt.f32.partialorder %v1125_v14, 0.5  ;;  %v806_v54 = vsel %vm802_vm9, %v1584_v8, 0.0  ;;  %vm819_vm12 = vcmp.ge.f32.partialorder %v1125_v14, 0.5  ;;  %v822_v43 = vsel %vm818_vm10, %v1584_v8, 0.0 }
 0x44e   :  { %v1129_v19 = vpop.eup %1128  ;;  %v807_v49 = vsel %vm803_vm11, %v1586_v9, 0.0  ;;  %v810_v35 = vadd.f32 %v806_v54, %v798_v33  ;;  %v823_v50 = vsel %vm819_vm12, %v1586_v9, 0.0  ;;  %v834_v55 = vadd.f32 %v830_v38, %v822_v43 }
 0x44f   :  { %v811_v52 = vadd.f32 %v807_v49, %v799_v34  ;;  %v835_v36 = vadd.f32 %v831_v12, %v823_v50  ;;  %vm800_vm13 = vcmp.lt.f32.partialorder %v1127_v20, 0.5  ;;  %vm801_vm14 = vcmp.lt.f32.partialorder %v1129_v19, 0.5  ;;  %v1131_v57 = vpop.eup %1130 }
 0x450   :  { %814 = vst [vmem:[#allocation2 + $0x10] sm:$0xff] %v810_v35  ;;  %838 = vst [vmem:[#allocation2 + $0x30] sm:$0xff] %v834_v55  ;;  %v804_v58 = vsel %vm800_vm13, %v1588_v4, 0.0  ;;  %v805_v59 = vsel %vm801_vm14, %v1590_v23, 0.0  ;;  %vm816_vm15 = vcmp.ge.f32.partialorder %v1127_v20, 0.5  ;;  %vm817_vm0 = vcmp.ge.f32.partialorder %v1129_v19, 0.5  ;;  %v1133_v8 = vpop.eup %1132 }
 0x451   :  { %815 = vst [vmem:[#allocation2 + $0x18] sm:$0xff] %v811_v52  ;;  %839 = vst [vmem:[#allocation2 + $0x38] sm:$0xff] %v835_v36  ;;  %v808_v51 = vadd.f32 %v804_v58, %v796_v45  ;;  %v809_v62 = vadd.f32 %v805_v59, %v797_v41  ;;  %v820_v9 = vsel %vm816_vm15, %v1588_v4, 0.0  ;;  %v821_v63 = vsel %vm817_vm0, %v1590_v23, 0.0  ;;  %v1135_v46 = vpop.eup %1134 }
 0x452   :  { %v832_v7 = vadd.f32 %v828_v39, %v820_v9  ;;  %v833_v13 = vadd.f32 %v829_v48, %v821_v63  ;;  %v1137_v61 = vpop.eup %1136  ;;  %v758_v3 = vadd.f32 1.0, %v1133_v8  ;;  %1142 = vpow2.f32 %v1638_v44 }
 0x453   :  { %812 = vst [vmem:[#allocation2] sm:$0xff] %v808_v51  ;;  %813 = vst [vmem:[#allocation2 + $0x8] sm:$0xff] %v809_v62  ;;  %v752_v4 = vadd.f32 1.0, %v1131_v57  ;;  %v753_v23 = vadd.f32 1.0, %v1135_v46  ;;  %vm842_vm1 = vcmp.ge.f32.partialorder %v1137_v61, 0.5  ;;  %vm874_vm2 = vcmp.lt.f32.partialorder %v1137_v61, 0.5 }
 0x454   :  { %836 = vst [vmem:[#allocation2 + $0x20] sm:$0xff] %v832_v7  ;;  %837 = vst [vmem:[#allocation2 + $0x28] sm:$0xff] %v833_v13  ;;  %1144 = vrcp.f32 %v758_v3  ;;  %v846_v47 = vsel %vm842_vm1, %v1598_v29, 0.0  ;;  %v878_v27 = vsel %vm874_vm2, %v1598_v29, 0.0 }
 0x455   :  { %v1139_v11 = vpop.eup %1138  ;;  %1146 = vpow2.f32 %v933_v18 }
 0x456   :  { %v759_v56 = vadd.f32 1.0, %v1139_v11  ;;  %v1141_v40 = vpop.eup %1140 }
 0x457   :  { %vm843_vm3 = vcmp.ge.f32.partialorder %v1141_v40, 0.5  ;;  %vm875_vm4 = vcmp.lt.f32.partialorder %v1141_v40, 0.5 }
 0x458   :  { %1148 = vrcp.f32 %v759_v56  ;;  %v847_v30 = vsel %vm843_vm3, %v1600_v37, 0.0  ;;  %v879_v44 = vsel %vm875_vm4, %v1600_v37, 0.0 }
 0x459   :  { %1150 = vrcp.f32 %v752_v4 }
 0x45a   :  { %1152 = vrcp.f32 %v753_v23 }
 0x45c   :  { %v1143_v16 = vpop.eup %1142 }
 0x45d   :  { %v756_v2 = vadd.f32 1.0, %v1143_v16 }
 0x45e   :  { %v1145_v17 = vpop.eup %1144 }
 0x45f   :  { %v1147_v24 = vpop.eup %1146  ;;  %vm850_vm5 = vcmp.lt.f32.partialorder %v1145_v17, 0.5  ;;  %vm866_vm6 = vcmp.ge.f32.partialorder %v1145_v17, 0.5  ;;  %1154 = vrcp.f32 %v756_v2 }
 0x460   :  { %v854_v5 = vsel %vm850_vm5, %v1612_v21, 0.0  ;;  %v870_v15 = vsel %vm866_vm6, %v1612_v21, 0.0  ;;  %v757_v25 = vadd.f32 1.0, %v1147_v24 }
 0x461   :  { %v858_v28 = vadd.f32 %v854_v5, %v846_v47  ;;  %v882_v6 = vadd.f32 %v878_v27, %v870_v15 }
 0x462   :  { %v1149_v26 = vpop.eup %1148  ;;  %1156 = vrcp.f32 %v757_v25 }
 0x463   :  { %vm851_vm7 = vcmp.lt.f32.partialorder %v1149_v26, 0.5  ;;  %vm867_vm8 = vcmp.ge.f32.partialorder %v1149_v26, 0.5  ;;  %862 = vst [vmem:[#allocation2 + $0x50] sm:$0xff] %v858_v28  ;;  %886 = vst [vmem:[#allocation2 + $0x70] sm:$0xff] %v882_v6  ;;  %v1151_v31 = vpop.eup %1150 }
 0x464   :  { %v855_v29 = vsel %vm851_vm7, %v1621_v60, 0.0  ;;  %v871_v0 = vsel %vm867_vm8, %v1621_v60, 0.0  ;;  %v1153_v33 = vpop.eup %1152  ;;  %vm840_vm9 = vcmp.ge.f32.partialorder %v1151_v31, 0.5  ;;  %vm872_vm10 = vcmp.lt.f32.partialorder %v1151_v31, 0.5 }
 0x465   :  { %v859_v21 = vadd.f32 %v855_v29, %v847_v30  ;;  %v883_v1 = vadd.f32 %v879_v44, %v871_v0  ;;  %vm841_vm11 = vcmp.ge.f32.partialorder %v1153_v33, 0.5  ;;  %vm873_vm12 = vcmp.lt.f32.partialorder %v1153_v33, 0.5 }
 0x466   :  { %v844_v38 = vsel %vm840_vm9, %v1608_v42, 0.0  ;;  %v876_v60 = vsel %vm872_vm10, %v1608_v42, 0.0  ;;  %v845_v39 = vsel %vm841_vm11, %v1616_v53, 0.0  ;;  %v877_v14 = vsel %vm873_vm12, %v1616_v53, 0.0 }
 0x467   :  { %863 = vst [vmem:[#allocation2 + $0x58] sm:$0xff] %v859_v21  ;;  %887 = vst [vmem:[#allocation2 + $0x78] sm:$0xff] %v883_v1 }
 0x469   :  { %v1155_v34 = vpop.eup %1154 }
 0x46a   :  { %vm848_vm13 = vcmp.lt.f32.partialorder %v1155_v34, 0.5  ;;  %vm864_vm14 = vcmp.ge.f32.partialorder %v1155_v34, 0.5 }
 0x46b   :  { %v852_v32 = vsel %vm848_vm13, %v1625_v10, 0.0  ;;  %v868_v12 = vsel %vm864_vm14, %v1625_v10, 0.0 }
 0x46c   :  { %v1157_v37 = vpop.eup %1156  ;;  %v856_v45 = vadd.f32 %v852_v32, %v844_v38  ;;  %v880_v41 = vadd.f32 %v876_v60, %v868_v12 }
 0x46d   :  { %vm849_vm15 = vcmp.lt.f32.partialorder %v1157_v37, 0.5  ;;  %vm865_vm0 = vcmp.ge.f32.partialorder %v1157_v37, 0.5 }
 0x46e   :  { %v853_v48 = vsel %vm849_vm15, %v1631_v22, 0.0  ;;  %v869_v20 = vsel %vm865_vm0, %v1631_v22, 0.0  ;;  %860 = vst [vmem:[#allocation2 + $0x40] sm:$0xff] %v856_v45  ;;  %884 = vst [vmem:[#allocation2 + $0x60] sm:$0xff] %v880_v41 }
 0x46f   :  { %v857_v54 = vadd.f32 %v853_v48, %v845_v39  ;;  %v881_v42 = vadd.f32 %v877_v14, %v869_v20 }
 0x471   :  { %861 = vst [vmem:[#allocation2 + $0x48] sm:$0xff] %v857_v54  ;;  %885 = vst [vmem:[#allocation2 + $0x68] sm:$0xff] %v881_v42 }
 0x472   :  { %1169 = shalt.err (!%p1166_p4)
}
 0x473   :  { %s1170_s11 = scalar_lea.hbm %s1692_s5, 2048 }
 0x474   :  { %p1171_p5 = scmp.ne.s32.totalorder %s1692_s5, %s1170_s11  ;;  %p1174_p6 = scmp.lt.u32.totalorder %s1170_s11, %s1692_s5 }
 0x476   :  { %p1176_p7 = pnand %p1174_p6, %p1171_p5 }
 0x478   :  { %1179 = shalt.err (!%p1176_p7)
}
 0x479   :  { %s1184_s0 = smov 256   ;;  %s1185_s15 = smov 16  }
 0x47a   :  { %899 = dma.vmem_to_hbm [thread:$0]  %s894_s3, 2048, %s1692_s5, [#allocation3], %s1184_s0, %s1184_s0, %s1185_s15  }
 0x47b   :  { %1180 = dma.done.wait [#allocation3], 2048  }
 0x47c   :  { %1181 = vsyncadd [#allocation3], 4294965248 }
 0x47d   :  { %903 = vsyncpa [#allocation3], 1 }

</bundles_post_ra>
